<compile_context>
chip_gen: v6e
topology: v6e:2x2x1
jax: 0.10.0
libtpu: 0.0.40
codegen_flags: <defaults>
</compile_context>

<pallas_src>
import jax
import jax.numpy as jnp
from jax.experimental import pallas as pl
from jax.experimental.pallas import tpu as pltpu

EPSILON = 1e-7
# cifar10 normalization stats (same as Normalize in nc.py)
CIFAR_MEAN = (0.4914, 0.4822, 0.4465)
CIFAR_STD = (0.247, 0.243, 0.261)


def _round_up(n, m):
    return ((n + m - 1) // m) * m


def _pick_batch_tile(batch):
    """Batch tile: multiple of 16 sublanes (bf16 x packing), capped at 512 rows, and
    sized so large batches produce >= 2 grid steps (keeps both v7x TCs busy under the
    'parallel' batch axis). A 512-row bf16 x-block at CIFAR size is < 1 MiB, trivially
    within VMEM on v5e/v6e/v7x with double buffering."""
    if batch <= 16:
        return 16
    half = -(-batch // 2)
    return min(512, _round_up(half, 16))


def _make_kernel(n_channels, p):
    """Kernel body. All mask / Normalize math was precomputed in the wrapper; the body
    is blend + per-channel MXU accumulation only."""

    def kernel(x_ref, inv_mask_ref, mpat_ref, w_ref, b_ref, out_ref):
        # x_ref:        (TB, C*P)   bf16   (tiled over batch)
        # inv_mask_ref: (1, P)      f32    resident: 1 - mask_eff
        # mpat_ref:     (C, P)      f32    resident: mask_eff * normalized_pattern
        # w_ref:        (C*P, NPAD) bf16   resident classifier weights
        # b_ref:        (1, NPAD)   f32    resident bias
        # out_ref:      (TB, NPAD)  f32
        inv_mask = inv_mask_ref[...]                                   # (1, P)

        acc = None
        for c in range(n_channels):                                    # static, small
            # static lane slice; offsets are multiples of 128 -> no relayout
            x_c = x_ref[:, c * p:(c + 1) * p].astype(jnp.float32)      # (TB, P)
            blend = inv_mask * x_c + mpat_ref[c:c + 1, :]              # (TB, P) f32
            # per-channel K-slice matmul, f32 accumulation on the MXU
            d = jnp.dot(blend.astype(jnp.bfloat16),
                        w_ref[c * p:(c + 1) * p, :],
                        preferred_element_type=jnp.float32)            # (TB, NPAD)
            acc = d if acc is None else acc + d

        out_ref[...] = acc + b_ref[...]

    return kernel


def regression_model_forward(x_nchw, mask_tanh, pattern_tanh, w_cls, b_cls,
                             mean=CIFAR_MEAN, std=CIFAR_STD):
    """x_nchw: (B, C, H, W) float32. Returns logits (B, num_classes) float32."""
    B, C, H, W = x_nchw.shape
    P = H * W
    N = w_cls.shape[-1]
    assert len(mean) == C and len(std) == C, "normalization stats must match channel count"

    TB = _pick_batch_tile(B)
    num_blocks = -(-B // TB)                 # cdiv; last block may be partial (no x pad)
    B_out = num_blocks * TB                  # padded rows exist only in the small output
    NPAD = _round_up(N, 128)                 # lane-dense output slab

    # x: contiguous reshape of NCHW (free) -> (B, C*P); bf16 halves HBM read traffic.
    x = x_nchw.reshape(B, C * P).astype(jnp.bfloat16)

    # Hoist all grid-invariant math (tanh, epsilon, Normalize, mask algebra) to the
    # wrapper: these are tiny (1,P)/(C,P) tensors computed once.
    eps = 2.0 + EPSILON
    mean_a = jnp.asarray(mean, jnp.float32).reshape(C, 1)
    std_a = jnp.asarray(std, jnp.float32).reshape(C, 1)
    mask_eff = jnp.tanh(mask_tanh.reshape(1, P).astype(jnp.float32)) / eps + 0.5   # get_raw_mask
    pat_eff = jnp.tanh(pattern_tanh.reshape(C, P).astype(jnp.float32)) / eps + 0.5  # get_raw_pattern
    pat_norm = (pat_eff - mean_a) / std_a                                           # Normalize
    inv_mask = 1.0 - mask_eff                                                       # (1, P)
    masked_pattern = mask_eff * pat_norm                                            # (C, P)

    # synthetic linear classifier head; bf16 weights = native MXU input, f32 accumulate
    w = w_cls.reshape(C * P, N).astype(jnp.bfloat16)
    w = jnp.pad(w, ((0, 0), (0, NPAD - N)))
    b = jnp.pad(b_cls.reshape(1, N).astype(jnp.float32), ((0, 0), (0, NPAD - N)))

    out = pl.pallas_call(
        _make_kernel(C, P),
        out_shape=jax.ShapeDtypeStruct((B_out, NPAD), jnp.float32),
        grid_spec=pltpu.PrefetchScalarGridSpec(
            num_scalar_prefetch=0,
            grid=(num_blocks,),
            in_specs=[
                pl.BlockSpec((TB, C * P), lambda i: (i, 0)),       # x: tiled over batch
                pl.BlockSpec((1, P), lambda i: (0, 0)),            # inv_mask: resident
                pl.BlockSpec((C, P), lambda i: (0, 0)),            # masked pattern: resident
                pl.BlockSpec((C * P, NPAD), lambda i: (0, 0)),     # W: resident in VMEM
                pl.BlockSpec((1, NPAD), lambda i: (0, 0)),         # bias: resident
            ],
            out_specs=pl.BlockSpec((TB, NPAD), lambda i: (i, 0)),
        ),
        compiler_params=pltpu.CompilerParams(
            dimension_semantics=("parallel",),                     # shard batch across TCs (v7x)
        ),
    )(x, inv_mask, masked_pattern, w, b)

    return out[:B, :N]


def _reference(x_nchw, mask_tanh, pattern_tanh, w_cls, b_cls,
               mean=CIFAR_MEAN, std=CIFAR_STD):
    """Pure-JAX reference of RegressionModel.forward evaluated at the kernel's I/O
    precision (x streamed in bf16, f32 blend, bf16 MXU inputs, f32 accumulation)."""
    B, C, H, W = x_nchw.shape
    eps = 2.0 + EPSILON
    mask = jnp.tanh(mask_tanh.astype(jnp.float32)) / eps + 0.5                  # (1, H, W)
    pattern = jnp.tanh(pattern_tanh.astype(jnp.float32)) / eps + 0.5            # (C, H, W)
    mean_a = jnp.asarray(mean, jnp.float32).reshape(C, 1, 1)
    std_a = jnp.asarray(std, jnp.float32).reshape(C, 1, 1)
    pattern = (pattern - mean_a) / std_a
    xq = x_nchw.astype(jnp.bfloat16).astype(jnp.float32)                        # kernel feeds x in bf16
    blended = (1.0 - mask)[None] * xq + (mask * pattern)[None]
    flat = blended.reshape(B, -1).astype(jnp.bfloat16)
    w = w_cls.reshape(-1, w_cls.shape[-1]).astype(jnp.bfloat16)
    return jnp.dot(flat, w, preferred_element_type=jnp.float32) + b_cls


if __name__ == "__main__":
    key = jax.random.PRNGKey(0)
    kx, km, kp, kw, kb = jax.random.split(key, 5)

    B, C, H, W = 2, 3, 16, 16       # cifar10-style: 3 channels (Normalize stats are 3-channel)
    num_classes = 10

    x = jax.random.normal(kx, (B, C, H, W), jnp.float32)
    # nn.Parameter(torch.tensor(init_mask)) / init_pattern — deterministic synthetic values
    mask_tanh = jax.random.normal(km, (1, H, W), jnp.float32)
    pattern_tanh = jax.random.normal(kp, (C, H, W), jnp.float32)
    # synthetic frozen classifier: linear head over flattened NCHW features
    w_cls = jax.random.normal(kw, (C, H * W, num_classes), jnp.float32) * 0.02
    b_cls = jax.random.normal(kb, (num_classes,), jnp.float32) * 0.01

    logits = regression_model_forward(x, mask_tanh, pattern_tanh, w_cls, b_cls)
    logits = jax.block_until_ready(logits)

    ref = _reference(x, mask_tanh, pattern_tanh, w_cls, b_cls)
    assert logits.shape == (B, num_classes)
    assert jnp.allclose(logits, ref, atol=2e-3, rtol=2e-3), float(jnp.max(jnp.abs(logits - ref)))

    print("KERNEL_OK")
</pallas_src>

<mosaic_0001>
module attributes {stable_mosaic.version = 11 : i64} {
  func.func @kernel(%arg0: i32, %arg1: memref<16x768xbf16, #tpu.memory_space<vmem>>, %arg2: memref<1x256xf32, #tpu.memory_space<vmem>>, %arg3: memref<3x256xf32, #tpu.memory_space<vmem>>, %arg4: memref<768x128xbf16, #tpu.memory_space<vmem>>, %arg5: memref<1x128xf32, #tpu.memory_space<vmem>>, %arg6: memref<16x128xf32, #tpu.memory_space<vmem>>) attributes {dimension_semantics = [#tpu.dimension_semantics<parallel>], iteration_bounds = array<i64: 1>, scalar_prefetch = 0 : i64, scratch_operands = 0 : i64, tpu.core_type = #tpu.core_type<tc>, window_params = [{transform_indices = @transform_0, window_bounds = array<i64: 16, 768>}, {pipeline_mode = #tpu.pipeline_mode<synchronous>, transform_indices = @transform_1, window_bounds = array<i64: 1, 256>}, {pipeline_mode = #tpu.pipeline_mode<synchronous>, transform_indices = @transform_2, window_bounds = array<i64: 3, 256>}, {pipeline_mode = #tpu.pipeline_mode<synchronous>, transform_indices = @transform_3, window_bounds = array<i64: 768, 128>}, {pipeline_mode = #tpu.pipeline_mode<synchronous>, transform_indices = @transform_4, window_bounds = array<i64: 1, 128>}, {transform_indices = @transform_5, window_bounds = array<i64: 16, 128>}]} {
    %c0 = arith.constant 0 : index
    %c0_0 = arith.constant 0 : index
    %0 = vector.load %arg2[%c0, %c0_0] : memref<1x256xf32, #tpu.memory_space<vmem>>, vector<1x256xf32>
    %c0_1 = arith.constant 0 : index
    %c0_2 = arith.constant 0 : index
    %1 = vector.load %arg1[%c0_1, %c0_2] : memref<16x768xbf16, #tpu.memory_space<vmem>>, vector<16x256xbf16>
    %2 = arith.extf %1 : vector<16x256xbf16> to vector<16x256xf32>
    %3 = vector.broadcast %0 : vector<1x256xf32> to vector<16x256xf32>
    %4 = arith.mulf %3, %2 : vector<16x256xf32>
    %c0_3 = arith.constant 0 : index
    %c0_4 = arith.constant 0 : index
    %5 = vector.load %arg3[%c0_3, %c0_4] : memref<3x256xf32, #tpu.memory_space<vmem>>, vector<1x256xf32>
    %6 = vector.broadcast %5 : vector<1x256xf32> to vector<16x256xf32>
    %7 = arith.addf %4, %6 : vector<16x256xf32>
    %8 = arith.truncf %7 : vector<16x256xf32> to vector<16x256xbf16>
    %c0_5 = arith.constant 0 : index
    %c0_6 = arith.constant 0 : index
    %9 = vector.load %arg4[%c0_5, %c0_6] : memref<768x128xbf16, #tpu.memory_space<vmem>>, vector<256x128xbf16>
    %cst = arith.constant dense<0.000000e+00> : vector<16x128xf32>
    %10 = tpu.matmul %8, %9, %cst {dimension_numbers = #tpu.dot_dimension_numbers<[1], [0], [0], [1], [0, 0, 1, 1], [], []>} : vector<16x256xbf16>, vector<256x128xbf16>, vector<16x128xf32> -> vector<16x128xf32>
    %c0_7 = arith.constant 0 : index
    %c256 = arith.constant 256 : index
    %11 = vector.load %arg1[%c0_7, %c256] : memref<16x768xbf16, #tpu.memory_space<vmem>>, vector<16x256xbf16>
    %12 = arith.extf %11 : vector<16x256xbf16> to vector<16x256xf32>
    %13 = vector.broadcast %0 : vector<1x256xf32> to vector<16x256xf32>
    %14 = arith.mulf %13, %12 : vector<16x256xf32>
    %c1 = arith.constant 1 : index
    %c0_8 = arith.constant 0 : index
    %15 = vector.load %arg3[%c1, %c0_8] : memref<3x256xf32, #tpu.memory_space<vmem>>, vector<1x256xf32>
    %16 = vector.broadcast %15 : vector<1x256xf32> to vector<16x256xf32>
    %17 = arith.addf %14, %16 : vector<16x256xf32>
    %18 = arith.truncf %17 : vector<16x256xf32> to vector<16x256xbf16>
    %c256_9 = arith.constant 256 : index
    %c0_10 = arith.constant 0 : index
    %19 = vector.load %arg4[%c256_9, %c0_10] : memref<768x128xbf16, #tpu.memory_space<vmem>>, vector<256x128xbf16>
    %cst_11 = arith.constant dense<0.000000e+00> : vector<16x128xf32>
    %20 = tpu.matmul %18, %19, %cst_11 {dimension_numbers = #tpu.dot_dimension_numbers<[1], [0], [0], [1], [0, 0, 1, 1], [], []>} : vector<16x256xbf16>, vector<256x128xbf16>, vector<16x128xf32> -> vector<16x128xf32>
    %21 = arith.addf %10, %20 : vector<16x128xf32>
    %c0_12 = arith.constant 0 : index
    %c512 = arith.constant 512 : index
    %22 = vector.load %arg1[%c0_12, %c512] : memref<16x768xbf16, #tpu.memory_space<vmem>>, vector<16x256xbf16>
    %23 = arith.extf %22 : vector<16x256xbf16> to vector<16x256xf32>
    %24 = vector.broadcast %0 : vector<1x256xf32> to vector<16x256xf32>
    %25 = arith.mulf %24, %23 : vector<16x256xf32>
    %c2 = arith.constant 2 : index
    %c0_13 = arith.constant 0 : index
    %26 = vector.load %arg3[%c2, %c0_13] : memref<3x256xf32, #tpu.memory_space<vmem>>, vector<1x256xf32>
    %27 = vector.broadcast %26 : vector<1x256xf32> to vector<16x256xf32>
    %28 = arith.addf %25, %27 : vector<16x256xf32>
    %29 = arith.truncf %28 : vector<16x256xf32> to vector<16x256xbf16>
    %c512_14 = arith.constant 512 : index
    %c0_15 = arith.constant 0 : index
    %30 = vector.load %arg4[%c512_14, %c0_15] : memref<768x128xbf16, #tpu.memory_space<vmem>>, vector<256x128xbf16>
    %cst_16 = arith.constant dense<0.000000e+00> : vector<16x128xf32>
    %31 = tpu.matmul %29, %30, %cst_16 {dimension_numbers = #tpu.dot_dimension_numbers<[1], [0], [0], [1], [0, 0, 1, 1], [], []>} : vector<16x256xbf16>, vector<256x128xbf16>, vector<16x128xf32> -> vector<16x128xf32>
    %32 = arith.addf %21, %31 : vector<16x128xf32>
    %c0_17 = arith.constant 0 : index
    %c0_18 = arith.constant 0 : index
    %33 = vector.load %arg5[%c0_17, %c0_18] : memref<1x128xf32, #tpu.memory_space<vmem>>, vector<1x128xf32>
    %34 = vector.broadcast %33 : vector<1x128xf32> to vector<16x128xf32>
    %35 = arith.addf %32, %34 : vector<16x128xf32>
    %c0_19 = arith.constant 0 : index
    %c0_20 = arith.constant 0 : index
    %36 = vector.load %arg6[%c0_19, %c0_20] : memref<16x128xf32, #tpu.memory_space<vmem>>, vector<16x128xf32>
    tpu.vector_store %arg6[%c0_19, %c0_20], %35 {strides = array<i32>} : memref<16x128xf32, #tpu.memory_space<vmem>>, vector<16x128xf32>,
    return
  }
  func.func @transform_0(%arg0: i32) -> (i32, i32) {
    %c0_i32 = arith.constant 0 : i32
    %c0_i32_0 = arith.constant 0 : i32
    return %arg0, %c0_i32 : i32, i32
  }
  func.func @transform_1(%arg0: i32) -> (i32, i32) {
    %c0_i32 = arith.constant 0 : i32
    %c0_i32_0 = arith.constant 0 : i32
    %c0_i32_1 = arith.constant 0 : i32
    return %c0_i32, %c0_i32_0 : i32, i32
  }
  func.func @transform_2(%arg0: i32) -> (i32, i32) {
    %c0_i32 = arith.constant 0 : i32
    %c0_i32_0 = arith.constant 0 : i32
    %c0_i32_1 = arith.constant 0 : i32
    return %c0_i32, %c0_i32_0 : i32, i32
  }
  func.func @transform_3(%arg0: i32) -> (i32, i32) {
    %c0_i32 = arith.constant 0 : i32
    %c0_i32_0 = arith.constant 0 : i32
    %c0_i32_1 = arith.constant 0 : i32
    return %c0_i32, %c0_i32_0 : i32, i32
  }
  func.func @transform_4(%arg0: i32) -> (i32, i32) {
    %c0_i32 = arith.constant 0 : i32
    %c0_i32_0 = arith.constant 0 : i32
    %c0_i32_1 = arith.constant 0 : i32
    return %c0_i32, %c0_i32_0 : i32, i32
  }
  func.func @transform_5(%arg0: i32) -> (i32, i32) {
    %c0_i32 = arith.constant 0 : i32
    %c0_i32_0 = arith.constant 0 : i32
    return %arg0, %c0_i32 : i32, i32
  }
}

</mosaic_0001>

<bundles_post_ra>
// kernel: tpu_custom_call.1
= control target key start
LH: loop header
LB: loop body
LE: loop exit
PB: predicated region body
PF: predicated region fallthrough
CT: control target
= control target key end

     0   :  { %10 = vsyncpa [#allocation3], 0  ;;  %s1269_s0 = inlined_call_operand.hbm [shape: bf16[2,768], index: 0, kind: input, shape index: {}]   ;;  %s1270_s1 = inlined_call_operand.hbm [shape: f32[1,256], index: 1, kind: input, shape index: {}]   ;;  %s1271_s2 = inlined_call_operand.hbm [shape: f32[3,256], index: 2, kind: input, shape index: {}]   ;;  %s1272_s3 = inlined_call_operand.hbm [shape: bf16[768,128], index: 3, kind: input, shape index: {}]   ;;  %s1273_s4 = inlined_call_operand.vmem [shape: f32[1,128], index: 4, kind: input, shape index: {}]   ;;  %s1274_s5 = inlined_call_operand.hbm [shape: f32[16,128], index: 5, kind: output, shape index: {}]  }
   0x1   :  { %11 = vsyncpa [#allocation6], 0 }
   0x2   :  { %12 = vsyncpa [#allocation9], 0 }
   0x3   :  { %13 = vsyncpa [#allocation4], 0 }
   0x4   :  { %18 = vsyncadd [#allocation3], 672  ;;  %s1167_s18 = smov [#allocation5]   ;;  %s1168_s20 = smov [#allocation2]  }
   0x5   :  { %s32_s19 = sshll.u32 %s1167_s18, 4  ;;  %s19_s21 = sshll.u32 %s1168_s20, 4  ;;  %s33_s19 = int_to_ptr.vmem [resolvable:$true] %s32_s19  ;;  %s20_s21 = int_to_ptr.vmem [resolvable:$true] %s19_s21 }
   0x6   :  { %s1067_s22 = scalar_lea.vmem %s33_s19, 32  ;;  %p1072_p1 = scmp.lt.s32.totalorder %s33_s19, %s33_s19 }
   0x7   :  { %p1068_p0 = scmp.ne.s32.totalorder %s33_s19, %s1067_s22  ;;  %p1073_p2 = scmp.lt.s32.totalorder %s1067_s22, %s1067_s22 }
   0x9   :  { %p1074_p3 = por %p1073_p2, %p1072_p1 }
   0xb   :  { %p1075_p4 = pnand %p1074_p3, %p1068_p0 }
   0xd   :  { %1078 = shalt.err (!%p1075_p4)
}
   0xe   :  { %35 = dma.hbm_to_vmem [thread:$0]  %s1270_s1, 32, %s33_s19, [#allocation6]  }
   0xf   :  { %s1087_s25 = scalar_lea.vmem %s20_s21, 96  ;;  %s1091_s26 = scalar_lea.vmem %s20_s21, 768 }
  0x10   :  { %p1088_p5 = scmp.ne.s32.totalorder %s20_s21, %s1087_s25  ;;  %p1092_p6 = scmp.lt.s32.totalorder %s20_s21, %s20_s21 }
  0x11   :  { %p1093_p7 = scmp.lt.s32.totalorder %s1091_s26, %s1087_s25 }
  0x13   :  { %p1094_p8 = por %p1093_p7, %p1092_p6 }
  0x15   :  { %p1095_p9 = pnand %p1094_p8, %p1088_p5 }
  0x17   :  { %1098 = shalt.err (!%p1095_p9)
}
  0x18   :  { %s1169_s27 = smov 96   ;;  %s1170_s28 = smov 6  }
  0x19   :  { %25 = dma.hbm_to_vmem [thread:$0]  %s1269_s0, 96, %s20_s21, [#allocation3], %s1169_s27, %s1169_s27, %s1170_s28  }
  0x1a   :  { %s1171_s6 = smov [#allocation7]   ;;  %s1172_s8 = smov [#allocation8]  }
  0x1b   :  { %s42_s7 = sshll.u32 %s1171_s6, 4  ;;  %s51_s9 = sshll.u32 %s1172_s8, 4  ;;  %s43_s7 = int_to_ptr.vmem [resolvable:$true] %s42_s7  ;;  %s52_s9 = int_to_ptr.vmem [resolvable:$true] %s51_s9 }
  0x1c   :  { %s1107_s1 = scalar_lea.vmem %s43_s7, 128  ;;  %p1112_p11 = scmp.lt.s32.totalorder %s43_s7, %s43_s7 }
  0x1d   :  { %p1108_p10 = scmp.ne.s32.totalorder %s43_s7, %s1107_s1  ;;  %p1113_p12 = scmp.lt.s32.totalorder %s1107_s1, %s1107_s1 }
  0x1f   :  { %p1114_p13 = por %p1113_p12, %p1112_p11 }
  0x21   :  { %p1115_p0 = pnand %p1114_p13, %p1108_p10 }
  0x23   :  { %1118 = shalt.err (!%p1115_p0)
}
  0x24   :  { %45 = dma.hbm_to_vmem [thread:$0]  %s1271_s2, 128, %s43_s7, [#allocation6]  }
  0x25   :  { %s1127_s12 = scalar_lea.vmem %s52_s9, 6144  ;;  %p1132_p2 = scmp.lt.s32.totalorder %s52_s9, %s52_s9 }
  0x26   :  { %p1128_p1 = scmp.ne.s32.totalorder %s52_s9, %s1127_s12  ;;  %p1133_p3 = scmp.lt.s32.totalorder %s1127_s12, %s1127_s12 }
  0x28   :  { %p1134_p4 = por %p1133_p3, %p1132_p2 }
  0x2a   :  { %p1135_p5 = pnand %p1134_p4, %p1128_p1 }
  0x2c   :  { %1138 = shalt.err (!%p1135_p5)
}
  0x2d   :  { %s1173_s0 = smov 64   ;;  %s1174_s13 = smov 4  }
  0x2e   :  { %57 = dma.hbm_to_vmem [thread:$0]  %s1272_s3, 6144, %s52_s9, [#allocation9], %s1173_s0, %s1173_s0, %s1174_s13  }
  0x2f   :  { %1159 = dma.done.wait [#allocation3], 768  }
  0x30   :  { %1160 = vsyncadd [#allocation3], 4294966528 }
  0x31   :  { %1161 = dma.done.wait [#allocation6], 160  }
  0x32   :  { %1162 = vsyncadd [#allocation6], 4294967136 }
  0x33   :  { %1163 = dma.done.wait [#allocation9], 6144  }
  0x34   :  { %1164 = vsyncadd [#allocation9], 4294961152  ;;  %v1011_v0 = vld [vmem:[#allocation8 + $0xf8] sm:$0xff]   ;;  %v1015_v4 = vld [vmem:[#allocation8 + $0xf0] sm:$0xff]   ;;  %v91_v24 = vlaneseq  ;;  %v1175_v27 = vmov 1983009808  }
  0x35   :  { %v1012_v1 = vld [vmem:[#allocation8 + $0x78] sm:$0xff]   ;;  %933 = vmatprep.subr.bf16.mxu0 %v1011_v0  ;;  %v1016_v5 = vld [vmem:[#allocation8 + $0x70] sm:$0xff]   ;;  %v1019_v8 = vld [vmem:[#allocation8 + $0xe8] sm:$0xff]   ;;  %v112_v28 = vunpack.c.l.s4 %v1175_v27  ;;  %s1176_s16 = smov [#allocation10]  }
  0x36   :  { %v1013_v2 = vld [vmem:[#allocation8 + $0xb8] sm:$0xff]   ;;  %955 = vmatprep.subr.bf16.mxu1 %v1012_v1  ;;  %v1017_v6 = vld [vmem:[#allocation8 + $0xb0] sm:$0xff]   ;;  %v1020_v9 = vld [vmem:[#allocation8 + $0x68] sm:$0xff]   ;;  %v92_v31 = vshrl.u32 %v91_v24, 7  ;;  %s870_s17 = sshll.u32 %s1176_s16, 4  ;;  %s871_s17 = int_to_ptr.vmem [resolvable:$true] %s870_s17 }
  0x37   :  { %v1014_v3 = vld [vmem:[#allocation8 + $0x38] sm:$0xff]   ;;  %934 = vmatpush3.bf16.msra.mxu0 %v1013_v2  ;;  %v1018_v7 = vld [vmem:[#allocation8 + $0x30] sm:$0xff]   ;;  %v1021_v10 = vld [vmem:[#allocation8 + $0xa8] sm:$0xff]   ;;  %v113_v35 = vunpack.c.0.s8 %v112_v28  ;;  %s1139_s18 = scalar_lea.vmem %s871_s17, 256  ;;  %p1144_p7 = scmp.lt.s32.totalorder %s871_s17, %s871_s17 }
  0x38   :  { %956 = vmatpush3.bf16.msra.mxu1 %v1014_v3  ;;  %935 = vmatprep.subr.bf16.mxu0 %v1015_v4  ;;  %v1022_v11 = vld [vmem:[#allocation8 + $0x28] sm:$0xff]   ;;  %v1023_v12 = vld [vmem:[#allocation8 + $0xe0] sm:$0xff]   ;;  %v1027_v16 = vld [vmem:[#allocation8 + $0xd8] sm:$0xff]   ;;  %v1221_v34 = vsub.s32 0, %v92_v31  ;;  %v1223_v37 = vsub.s32 1, %v92_v31  ;;  %p1140_p6 = scmp.ne.s32.totalorder %s871_s17, %s1139_s18  ;;  %p1145_p8 = scmp.lt.s32.totalorder %s1139_s18, %s1139_s18 }
  0x39   :  { %957 = vmatprep.subr.bf16.mxu1 %v1016_v5  ;;  %v1024_v13 = vld [vmem:[#allocation8 + $0x60] sm:$0xff]   ;;  %v1028_v17 = vld [vmem:[#allocation8 + $0x58] sm:$0xff]   ;;  %v1031_v20 = vld [vmem:[#allocation8 + $0xd0] sm:$0xff]   ;;  %v1228_v43 = vsub.s32 %v113_v35, %v92_v31 }
  0x3a   :  { %v1025_v14 = vld [vmem:[#allocation8 + $0xa0] sm:$0xff]   ;;  %v1029_v18 = vld [vmem:[#allocation8 + $0x98] sm:$0xff]   ;;  %v1032_v21 = vld [vmem:[#allocation8 + $0x50] sm:$0xff]   ;;  %p1146_p9 = por %p1145_p8, %p1144_p7 }
  0x3b   :  { %936 = vmatpush3.bf16.msra.mxu0 %v1017_v6  ;;  %v1026_v15 = vld [vmem:[#allocation8 + $0x20] sm:$0xff]   ;;  %v1030_v19 = vld [vmem:[#allocation8 + $0x18] sm:$0xff]   ;;  %v1033_v22 = vld [vmem:[#allocation8 + $0x90] sm:$0xff]  }
  0x3c   :  { %958 = vmatpush3.bf16.msra.mxu1 %v1018_v7  ;;  %937 = vmatprep.subr.bf16.mxu0 %v1019_v8  ;;  %v1034_v23 = vld [vmem:[#allocation8 + $0x10] sm:$0xff]   ;;  %v1035_v25 = vld [vmem:[#allocation8 + $0xc8] sm:$0xff]   ;;  %v1039_v32 = vld [vmem:[#allocation8 + $0xc0] sm:$0xff]   ;;  %p1147_p10 = pnand %p1146_p9, %p1140_p6 }
  0x3d   :  { %959 = vmatprep.subr.bf16.mxu1 %v1020_v9  ;;  %v1036_v26 = vld [vmem:[#allocation8 + $0x48] sm:$0xff]   ;;  %v1040_v33 = vld [vmem:[#allocation8 + $0x40] sm:$0xff]   ;;  %v73_v39 = vld [vmem:[#allocation5] sm:$0x3] }
  0x3e   :  { %v1037_v29 = vld [vmem:[#allocation8 + $0x88] sm:$0xff]   ;;  %v1041_v36 = vld [vmem:[#allocation8 + $0x80] sm:$0xff]   ;;  %v1226_v42 = vrot.slane %v73_v39, %v1221_v34  ;;  %v205_v44 = vld [vmem:[#allocation2 + $0xe] sm:$0x3]  ;;  %v1231_v49 = vrot.slane %v73_v39, %v1223_v37 }
  0x3f   :  { %938 = vmatpush3.bf16.msra.mxu0 %v1021_v10  ;;  %v1038_v30 = vld [vmem:[#allocation8 + $0x8] sm:$0xff]   ;;  %v1042_v38 = vld [vmem:[#allocation8] sm:$0xff]   ;;  %v206_v45 = vld [vmem:[#allocation2 + $0x14] sm:$0x3]  ;;  %v213_v53 = vunpack.c.l.bf16 %v205_v44 }
  0x40   :  { %960 = vmatpush3.bf16.msra.mxu1 %v1022_v11  ;;  %939 = vmatprep.subr.bf16.mxu0 %v1023_v12  ;;  %v203_v40 = vld [vmem:[#allocation2 + $0x2] sm:$0x3]  ;;  %v204_v41 = vld [vmem:[#allocation2 + $0x8] sm:$0x3]  ;;  %v207_v46 = vld [vmem:[#allocation2 + $0x1a] sm:$0x3]  ;;  %v214_v54 = vunpack.c.l.bf16 %v206_v45 }
  0x41   :  { %961 = vmatprep.subr.bf16.mxu1 %v1024_v13  ;;  %v211_v47 = vunpack.c.l.bf16 %v203_v40  ;;  %v212_v48 = vunpack.c.l.bf16 %v204_v41  ;;  %v208_v50 = vld [vmem:[#allocation2 + $0x20] sm:$0x3]  ;;  %v209_v51 = vld [vmem:[#allocation2 + $0x26] sm:$0x3]  ;;  %v210_v52 = vld [vmem:[#allocation2 + $0x2c] sm:$0x3]  ;;  %v215_v55 = vunpack.c.l.bf16 %v207_v46 }
  0x42   :  { %v216_v56 = vunpack.c.l.bf16 %v208_v50  ;;  %v217_v57 = vunpack.c.l.bf16 %v209_v51  ;;  %v218_v58 = vunpack.c.l.bf16 %v210_v52  ;;  %v272_v60 = vld [vmem:[#allocation7 + $0x1] ss:$4 sm:$0x3]  ;;  %v74_v61 = vld [vmem:[#allocation2] sm:$0x3]  ;;  %v228_v63 = vcombine.low %v213_v53, %v214_v54 }
  0x43   :  { %940 = vmatpush3.bf16.msra.mxu0 %v1025_v14  ;;  %v227_v59 = vcombine.low %v211_v47, %v212_v48  ;;  %v1043_v62 = vld [vmem:[#allocation8 + $0x178] sm:$0xff]   ;;  %v277_v0 = vrot.slane %v272_v60, %v1221_v34  ;;  %v281_v1 = vrot.slane %v272_v60, %v1223_v37  ;;  %v75_v2 = vld [vmem:[#allocation2 + $0x6] sm:$0x3]  ;;  %v76_v3 = vld [vmem:[#allocation2 + $0xc] sm:$0x3]  ;;  %v82_v5 = vunpack.c.l.bf16 %v74_v61 }
  0x44   :  { %962 = vmatpush3.bf16.msra.mxu1 %v1026_v15  ;;  %941 = vmatprep.subr.bf16.mxu0 %v1027_v16  ;;  %v77_v4 = vld [vmem:[#allocation2 + $0x12] sm:$0x3]  ;;  %v245_v7 = vcombine.low %v215_v55, %v216_v56  ;;  %v246_v8 = vcombine.low %v217_v57, %v218_v58  ;;  %v78_v9 = vld [vmem:[#allocation2 + $0x18] sm:$0x3]  ;;  %v79_v10 = vld [vmem:[#allocation2 + $0x1e] sm:$0x3]  ;;  %v83_v12 = vunpack.c.l.bf16 %v75_v2  ;;  %v242_v13 = vrot.slane %v228_v63, %v1228_v43 }
  0x45   :  { %963 = vmatprep.subr.bf16.mxu1 %v1028_v17  ;;  %v235_v6 = vrot.slane %v227_v59, %v1228_v43  ;;  %v80_v11 = vld [vmem:[#allocation2 + $0x24] sm:$0x3]  ;;  %v81_v14 = vld [vmem:[#allocation2 + $0x2a] sm:$0x3]  ;;  %v84_v15 = vunpack.c.l.bf16 %v76_v3  ;;  %v85_v16 = vunpack.c.l.bf16 %v77_v4  ;;  %v86_v17 = vunpack.c.l.bf16 %v78_v9 }
  0x46   :  { %v89_v24 = vunpack.c.l.bf16 %v81_v14  ;;  %v597_v9 = vld [vmem:[#allocation2 + $0xa] sm:$0x3] }
  0x47   :  { %942 = vmatpush3.bf16.msra.mxu0 %v1029_v18  ;;  %v153_v18 = vld [vmem:[#allocation7] ss:$4 sm:$0x3]  ;;  %v243_v39 = vcombine.low %v235_v6, %v242_v13  ;;  %v605_v14 = vunpack.c.l.bf16 %v597_v9 }
  0x48   :  { %964 = vmatpush3.bf16.msra.mxu1 %v1030_v19  ;;  %943 = vmatprep.subr.bf16.mxu0 %v1031_v20  ;;  %v253_v19 = vrot.slane %v245_v7, %v1228_v43  ;;  %v260_v20 = vrot.slane %v246_v8, %v1228_v43  ;;  %v1047_v7 = vld [vmem:[#allocation8 + $0x168] sm:$0xff]  }
  0x49   :  { %965 = vmatprep.subr.bf16.mxu1 %v1032_v21  ;;  %v87_v21 = vunpack.c.l.bf16 %v79_v10  ;;  %v267_v48 = vmul.f32 %v243_v39, %v1226_v42  ;;  %v596_v8 = vld [vmem:[#allocation2 + $0x4] sm:$0x3]  ;;  %v598_v10 = vld [vmem:[#allocation2 + $0x10] sm:$0x3] }
  0x4a   :  { %v262_v27 = vcombine.high %v253_v19, %v260_v20  ;;  %v261_v40 = vcombine.low %v253_v19, %v260_v20 }
  0x4b   :  { %944 = vmatpush3.bf16.msra.mxu0 %v1033_v22  ;;  %v88_v22 = vunpack.c.l.bf16 %v80_v11  ;;  %v127_v28 = vcombine.low %v86_v17, %v87_v21  ;;  %v284_v56 = vadd.f32 %v277_v0, %v267_v48  ;;  %v599_v11 = vld [vmem:[#allocation2 + $0x16] sm:$0x3]  ;;  %v603_v17 = vld [vmem:[#allocation2 + $0x2e] sm:$0x3]  ;;  %v1049_v21 = vld [vmem:[#allocation8 + $0x160] sm:$0xff]  }
  0x4c   :  { %966 = vmatpush3.bf16.msra.mxu1 %v1034_v23  ;;  %945 = vmatprep.subr.bf16.mxu0 %v1035_v25  ;;  %v244_v23 = vcombine.high %v235_v6, %v242_v13  ;;  %v109_v25 = vcombine.low %v82_v5, %v83_v12  ;;  %v269_v50 = vmul.f32 %v261_v40, %v1226_v42  ;;  %v1046_v6 = vld [vmem:[#allocation8 + $0x130] sm:$0xff]   ;;  %v600_v12 = vld [vmem:[#allocation2 + $0x1c] sm:$0x3]  ;;  %v604_v13 = vunpack.c.l.bf16 %v596_v8 }
  0x4d   :  { %967 = vmatprep.subr.bf16.mxu1 %v1036_v26  ;;  %v110_v26 = vcombine.low %v84_v15, %v85_v16  ;;  %v128_v35 = vcombine.low %v88_v22, %v89_v24  ;;  %v601_v15 = vld [vmem:[#allocation2 + $0x22] sm:$0x3]  ;;  %v602_v16 = vld [vmem:[#allocation2 + $0x28] sm:$0x3]  ;;  %v607_v19 = vunpack.c.l.bf16 %v599_v11  ;;  %v608_v20 = vunpack.c.l.bf16 %v600_v12  ;;  %v932_v11 = vld [vmem:[%s1273_s4] ss:$0 sm:$0xff] }
  0x4e   :  { %v268_v31 = vmul.f32 %v244_v23, %v1231_v49  ;;  %v286_v57 = vadd.f32 %v277_v0, %v269_v50  ;;  %v1048_v0 = vld [vmem:[#allocation8 + $0x128] sm:$0xff]   ;;  %v609_v22 = vunpack.c.l.bf16 %v601_v15  ;;  %v610_v23 = vunpack.c.l.bf16 %v602_v16 }
  0x4f   :  { %946 = vmatpush3.bf16.msra.mxu0 %v1037_v29  ;;  %v158_v29 = vrot.slane %v153_v18, %v1221_v34  ;;  %v142_v45 = vrot.slane %v128_v35, %v1228_v43  ;;  %v611_v24 = vunpack.c.l.bf16 %v603_v17 }
  0x50   :  { %968 = vmatpush3.bf16.msra.mxu1 %v1038_v30  ;;  %947 = vmatprep.subr.bf16.mxu0 %v1039_v32  ;;  %v162_v30 = vrot.slane %v153_v18, %v1223_v37  ;;  %v117_v32 = vrot.slane %v109_v25, %v1228_v43  ;;  %v285_v41 = vadd.f32 %v281_v1, %v268_v31  ;;  %v606_v18 = vunpack.c.l.bf16 %v598_v10  ;;  %v1050_v31 = vld [vmem:[#allocation8 + $0x120] sm:$0xff]  }
  0x51   :  { %969 = vmatprep.subr.bf16.mxu1 %v1040_v33  ;;  %v124_v33 = vrot.slane %v110_v26, %v1228_v43  ;;  %v288_v63 = vpack.c.bf16 %v286_v57, %v284_v56  ;;  %v620_v25 = vcombine.low %v604_v13, %v605_v14  ;;  %v1056_v56 = vld [vmem:[#allocation8 + $0x108] sm:$0xff]  }
  0x52   :  { %v621_v26 = vcombine.low %v606_v18, %v607_v19 }
  0x53   :  { %948 = vmatpush3.bf16.msra.mxu0 %v1041_v36  ;;  %v270_v36 = vmul.f32 %v262_v27, %v1231_v49  ;;  %v126_v44 = vcombine.high %v117_v32, %v124_v33  ;;  %v125_v46 = vcombine.low %v117_v32, %v124_v33  ;;  %v628_v27 = vrot.slane %v620_v25, %v1228_v43  ;;  %v1051_v33 = vld [vmem:[#allocation8 + $0x158] sm:$0xff]  }
  0x54   :  { %970 = vmatpush3.bf16.msra.mxu1 %v1042_v38  ;;  %977 = vmatprep.subr.bf16.mxu0 %v1043_v62  ;;  %v135_v38 = vrot.slane %v127_v28, %v1228_v43  ;;  %v1044_v62 = vld [vmem:[#allocation8 + $0x138] sm:$0xff]   ;;  %v638_v28 = vcombine.low %v608_v20, %v609_v22  ;;  %v635_v32 = vrot.slane %v621_v26, %v1228_v43 }
  0x55   :  { %v287_v47 = vadd.f32 %v281_v1, %v270_v36  ;;  %v150_v52 = vmul.f32 %v126_v44, %v1231_v49  ;;  %v149_v54 = vmul.f32 %v125_v46, %v1226_v42  ;;  %v1045_v1 = vld [vmem:[#allocation8 + $0x170] sm:$0xff]  }
  0x56   :  { %v144_v51 = vcombine.high %v135_v38, %v142_v45  ;;  %v143_v53 = vcombine.low %v135_v38, %v142_v45  ;;  %v646_v35 = vrot.slane %v638_v28, %v1228_v43  ;;  %v637_v38 = vcombine.high %v628_v27, %v635_v32  ;;  %v1053_v45 = vld [vmem:[#allocation8 + $0x150] sm:$0xff]  }
  0x57   :  { %v289_v55 = vpack.c.bf16 %v287_v47, %v285_v41  ;;  %v166_v59 = vadd.f32 %v162_v30, %v150_v52  ;;  %v165_v61 = vadd.f32 %v158_v29, %v149_v54  ;;  %v1052_v41 = vld [vmem:[#allocation8 + $0x118] sm:$0xff]   ;;  %v636_v50 = vcombine.low %v628_v27, %v635_v32  ;;  %v1054_v52 = vld [vmem:[#allocation8 + $0x110] sm:$0xff]  }
  0x58   :  { %v152_v58 = vmul.f32 %v144_v51, %v1231_v49  ;;  %v151_v60 = vmul.f32 %v143_v53, %v1226_v42  ;;  %v661_v44 = vmul.f32 %v637_v38, %v1231_v49 }
  0x59   :  { %450 = vmatprep.mubr.bf16.mxu0 %v289_v55  ;;  %v660_v54 = vmul.f32 %v636_v50, %v1226_v42 }
  0x5a   :  { %v168_v2 = vadd.f32 %v162_v30, %v152_v58  ;;  %v167_v3 = vadd.f32 %v158_v29, %v151_v60  ;;  %451 = vmatmul.mubr.bf16.vlgmr.msra.gmra.mxu0 %v288_v63  ;;  %v639_v29 = vcombine.low %v610_v23, %v611_v24  ;;  %v665_v30 = vld [vmem:[#allocation7 + $0x2] ss:$4 sm:$0x3] }
  0x5b   :  { %978 = vmatpush3.bf16.msra.mxu0 %v1044_v62  ;;  %v674_v39 = vrot.slane %v665_v30, %v1223_v37  ;;  %v670_v37 = vrot.slane %v665_v30, %v1221_v34 }
  0x5c   :  { %v170_v4 = vpack.c.bf16 %v168_v2, %v166_v59  ;;  %v169_v5 = vpack.c.bf16 %v167_v3, %v165_v61  ;;  %979 = vmatprep.subr.bf16.mxu0 %v1045_v1  ;;  %v653_v36 = vrot.slane %v639_v29, %v1228_v43  ;;  %v1055_v43 = vld [vmem:[#allocation8 + $0x148] sm:$0xff]   ;;  %v1058_v59 = vld [vmem:[#allocation8 + $0x100] sm:$0xff]  }
  0x5d   :  { %v678_v47 = vadd.f32 %v674_v39, %v661_v44  ;;  %v677_v57 = vadd.f32 %v670_v37, %v660_v54 }
  0x5e   :  { %587 = vmatprep.mubr.bf16.mxu1 %v170_v4  ;;  %v655_v40 = vcombine.high %v646_v35, %v653_v36  ;;  %v654_v51 = vcombine.low %v646_v35, %v653_v36 }
  0x5f   :  { %588 = vmatmul.mubr.bf16.vlgmr.msra.gmra.mxu1 %v169_v5  ;;  %980 = vmatpush3.bf16.msra.mxu0 %v1046_v6 }
  0x60   :  { %981 = vmatprep.subr.bf16.mxu0 %v1047_v7  ;;  %v663_v46 = vmul.f32 %v655_v40, %v1231_v49  ;;  %v662_v55 = vmul.f32 %v654_v51, %v1226_v42  ;;  %v1057_v49 = vld [vmem:[#allocation8 + $0x140] sm:$0xff]  }
  0x62   :  { %v680_v48 = vadd.f32 %v674_v39, %v663_v46  ;;  %v679_v58 = vadd.f32 %v670_v37, %v662_v55 }
  0x63   :  { %982 = vmatpush3.bf16.msra.mxu0 %v1048_v0 }
  0x64   :  { %983 = vmatprep.subr.bf16.mxu0 %v1049_v21  ;;  %v682_v53 = vpack.c.bf16 %v680_v48, %v678_v47  ;;  %v681_v60 = vpack.c.bf16 %v679_v58, %v677_v57 }
  0x66   :  { %843 = vmatprep.mubr.bf16.mxu0 %v682_v53 }
  0x67   :  { %984 = vmatpush3.bf16.msra.mxu0 %v1050_v31 }
  0x68   :  { %985 = vmatprep.subr.bf16.mxu0 %v1051_v33 }
  0x6b   :  { %986 = vmatpush3.bf16.msra.mxu0 %v1052_v41 }
  0x6c   :  { %987 = vmatprep.subr.bf16.mxu0 %v1053_v45 }
  0x6f   :  { %988 = vmatpush3.bf16.msra.mxu0 %v1054_v52 }
  0x70   :  { %989 = vmatprep.subr.bf16.mxu0 %v1055_v43 }
  0x73   :  { %990 = vmatpush3.bf16.msra.mxu0 %v1056_v56 }
  0x74   :  { %991 = vmatprep.subr.bf16.mxu0 %v1057_v49 }
  0x77   :  { %992 = vmatpush3.bf16.msra.mxu0 %v1058_v59 }
  0x7a   :  { %844 = vmatmul.mubr.bf16.vlgmr.msra.gmra.mxu0 %v681_v60 }
 0x11a   :  { %v949_v61 = vpop.f32.mrf.mxu0 }
 0x11c   :  { %v950_v34 = vpop.f32.mrf.mxu0 }
 0x11d   :  { %v951_v42 = vadd.f32 %v950_v34, %v949_v61 }
 0x11e   :  { %v952_v1 = vpop.f32.mrf.mxu0 }
 0x11f   :  { %v971_v62 = vpop.f32.mrf.mxu1 }
 0x120   :  { %v953_v3 = vpop.f32.mrf.mxu0 }
 0x121   :  { %v972_v63 = vpop.f32.mrf.mxu1  ;;  %v954_v8 = vadd.f32 %v953_v3, %v952_v1 }
 0x122   :  { %v973_v4 = vadd.f32 %v972_v63, %v971_v62 }
 0x123   :  { %v974_v2 = vpop.f32.mrf.mxu1 }
 0x124   :  { %v590_v0 = vadd.f32 %v973_v4, %v951_v42 }
 0x125   :  { %v975_v5 = vpop.f32.mrf.mxu1 }
 0x126   :  { %v976_v9 = vadd.f32 %v975_v5, %v974_v2 }
 0x128   :  { %v593_v15 = vadd.f32 %v976_v9, %v954_v8 }
 0x13a   :  { %v993_v6 = vpop.f32.mrf.mxu0 }
 0x13c   :  { %v994_v7 = vpop.f32.mrf.mxu0 }
 0x13d   :  { %v995_v10 = vadd.f32 %v994_v7, %v993_v6 }
 0x13e   :  { %v996_v12 = vpop.f32.mrf.mxu0 }
 0x13f   :  { %v852_v13 = vadd.f32 %v995_v10, %v590_v0 }
 0x140   :  { %v997_v14 = vpop.f32.mrf.mxu0 }
 0x141   :  { %v861_v16 = vadd.f32 %v932_v11, %v852_v13  ;;  %v998_v17 = vadd.f32 %v997_v14, %v996_v12 }
 0x143   :  { %863 = vst [vmem:[#allocation10] sm:$0xff] %v861_v16  ;;  %v853_v18 = vadd.f32 %v998_v17, %v593_v15 }
 0x145   :  { %v862_v19 = vadd.f32 %v932_v11, %v853_v18 }
 0x147   :  { %864 = vst [vmem:[#allocation10 + $0x8] sm:$0xff] %v862_v19 }
 0x148   :  { %1150 = shalt.err (!%p1147_p10)
}
 0x149   :  { %s1177_s4 = smov 128   ;;  %s1178_s19 = smov 8  }
 0x14a   :  { %876 = dma.vmem_to_hbm [thread:$0]  %s871_s17, 256, %s1274_s5, [#allocation4], %s1177_s4, %s1177_s4, %s1178_s19  }
 0x14b   :  { %1165 = dma.done.wait [#allocation4], 256  }
 0x14c   :  { %1166 = vsyncadd [#allocation4], 4294967040 }
 0x14d   :  { %880 = vsyncpa [#allocation3], 1 }
 0x14e   :  { %881 = vsyncpa [#allocation6], 1 }
 0x14f   :  { %882 = vsyncpa [#allocation9], 1 }
 0x150   :  { %883 = vsyncpa [#allocation4], 1 }

</bundles_post_ra>
